<compile_context>
chip_gen: v7x
topology: tpu7x:2x2x1
jax: 0.10.0
libtpu: 0.0.40
codegen_flags: <defaults>
</compile_context>

<pallas_src>
import math

import jax
import jax.numpy as jnp
from jax.experimental import pallas as pl
from jax.experimental.pallas import tpu as pltpu

_LN_EPS = 1e-5
_LANE = 128


def _pick_batch_block(batch, feat):
    """Batches per grid step: smallest TB with TB*feat % 128 == 0, grown a bit."""
    tb = _LANE // math.gcd(feat, _LANE)
    # Grow TB to amortize per-grid-step overhead, but keep >= 2 grid steps when
    # possible (so v7x's two TensorCores both get work) and a modest VMEM tile.
    while tb * 2 * feat <= 2048 and batch // (tb * 2) >= 2:
        tb *= 2
    return tb


def _make_kernel(seq_len, out_len, dropout_p, training):
    use_dropout = (dropout_p is not None) and (dropout_p > 0.0) and training
    if use_dropout:
        # Static uint32 threshold: P(bits >= thresh) == 1 - dropout_p.
        _thresh = min(int(round(dropout_p * (1 << 32))), (1 << 32) - 1)
        _inv_keep = 1.0 / (1.0 - dropout_p)

    def kernel(seed_ref, x_ref, gamma_ref, beta_ref, segavg_ref, w_ref, o_ref):
        # x tile: (seq_len, TB*F) f32-after-cast; lanes are [batch-major, feat-minor].
        x = x_ref[...].astype(jnp.float32)
        seq_last = x[seq_len - 1:, :]                      # (1, TB*F) last observed frame

        # --- norm_on_last_input: subtract last observed frame -------------------
        xc = x - seq_last

        # --- MotionLayerNorm over each F-wide lane segment (per batch, per frame)
        # Segment mean / var via a block-average matrix on the MXU (two-pass).
        mean = jnp.dot(xc, segavg_ref[...], preferred_element_type=jnp.float32)
        d = xc - mean
        var = jnp.dot(d * d, segavg_ref[...], preferred_element_type=jnp.float32)
        xn = d * jax.lax.rsqrt(var + _LN_EPS)
        xn = xn * gamma_ref[...] + beta_ref[...]

        # --- dropout (only active in training mode) -----------------------------
        if use_dropout:
            # Mix the grid index into the seed (avoids correlated adjacent seeds).
            pltpu.prng_seed(seed_ref[0], pl.program_id(0))
            bits = pltpu.bitcast(pltpu.prng_random_bits(xn.shape), jnp.uint32)
            keep = bits >= jnp.uint32(_thresh)             # direct uint32 compare
            xn = jnp.where(keep, xn * _inv_keep, 0.0)

        # --- concrete forward ----------------------------------------------------
        # TODO(synk): BaseTorchModule.forward is abstract in the source module; a
        # linear map over the time axis stands in for a concrete subclass.
        pred = jnp.dot(w_ref[...], xn, preferred_element_type=jnp.float32)

        # --- un-normalize: predictions + seq_last --------------------------------
        o_ref[...] = (pred + seq_last).astype(o_ref.dtype)

    return kernel


def base_module_forward(params, input_tensor, *, future_size, config,
                        training=False, seed=0):
    """Pallas-backed equivalent of the decorated BaseTorchModule forward.

    input_tensor: [B, S, P, D] or unbatched [S, P, D] (allow_unbatched).
    Returns predictions: [B, future_size, P, D] (or unbatched if input was).
    """
    # ---- allow_unbatched (glue) --------------------------------------------
    unbatched = input_tensor.ndim == 3
    if unbatched:
        input_tensor = input_tensor[None]

    B, S, P, D = input_tensor.shape
    assert S == config["input_size"]
    assert P == config["num_points"] and D == config["num_dims"]
    assert future_size == config["output_size"], "stand-in forward is sized to output_size"
    F = P * D
    out_len = config["output_size"]

    TB = _pick_batch_block(B, F)
    LB = TB * F                                   # lane width per grid step (mult of 128)
    B_pad = ((B + TB - 1) // TB) * TB
    grid = (B_pad // TB,)

    # ---- lane-dense layout plumbing: fold batch into the lane dim -----------
    # (S, B_pad*F) with lanes ordered [batch-major, feature-minor]. Native dtype
    # is kept (no wrapper f32 cast); the kernel casts on the fly.
    x_flat = input_tensor.reshape(B, S, F)
    if B_pad != B:
        x_flat = jnp.pad(x_flat, ((0, B_pad - B), (0, 0), (0, 0)))
    x_lanes = jnp.transpose(x_flat, (1, 0, 2)).reshape(S, B_pad * F)

    gamma_lanes = jnp.tile(params["gamma"].reshape(1, F).astype(jnp.float32), (1, TB))
    beta_lanes = jnp.tile(params["beta"].reshape(1, F).astype(jnp.float32), (1, TB))
    w_time = params["w_time"].astype(jnp.float32)                   # (out_len, S)

    # Block-average matrix: 1/F on same-batch F-wide lane segments, else 0.
    seg = jnp.arange(LB, dtype=jnp.int32) // F
    segavg = (seg[:, None] == seg[None, :]).astype(jnp.float32) * (1.0 / F)

    seed_arr = jnp.array([seed], dtype=jnp.int32)
    kernel = _make_kernel(S, out_len, config["dropout_value"], training)

    out_lanes = pl.pallas_call(
        kernel,
        out_shape=jax.ShapeDtypeStruct((out_len, B_pad * F), input_tensor.dtype),
        grid_spec=pltpu.PrefetchScalarGridSpec(
            num_scalar_prefetch=1,
            grid=grid,
            in_specs=[
                pl.BlockSpec((S, LB), lambda i, sref: (0, i)),          # x (lane-blocked)
                pl.BlockSpec((1, LB), lambda i, sref: (0, 0)),          # gamma (resident)
                pl.BlockSpec((1, LB), lambda i, sref: (0, 0)),          # beta (resident)
                pl.BlockSpec((LB, LB), lambda i, sref: (0, 0)),         # seg-avg (resident)
                pl.BlockSpec((out_len, S), lambda i, sref: (0, 0)),     # w_time (resident)
            ],
            out_specs=pl.BlockSpec((out_len, LB), lambda i, sref: (0, i)),
        ),
        compiler_params=pltpu.CompilerParams(dimension_semantics=("parallel",)),
    )(seed_arr, x_lanes, gamma_lanes, beta_lanes, segavg, w_time)

    # ---- unpack lane-dense output back to [B, out_len, P, D] ----------------
    predictions = (out_lanes.reshape(out_len, B_pad, F)
                   .transpose(1, 0, 2)[:B]
                   .reshape(B, out_len, P, D))
    if unbatched:
        predictions = jnp.squeeze(predictions, axis=0)
    return predictions


def _reference_forward(params, x, config):
    """Pure-JAX reference (eval mode) for correctness checking."""
    B, S, P, D = x.shape
    F = P * D
    xf = x.reshape(B, S, F).astype(jnp.float32)
    seq_last = xf[:, -1:, :]
    xc = xf - seq_last
    mean = jnp.mean(xc, axis=-1, keepdims=True)
    var = jnp.mean(jnp.square(xc - mean), axis=-1, keepdims=True)
    xn = (xc - mean) / jnp.sqrt(var + _LN_EPS)
    xn = xn * params["gamma"].reshape(1, 1, F) + params["beta"].reshape(1, 1, F)
    pred = jnp.einsum("ts,bsf->btf", params["w_time"], xn) + seq_last
    return pred.reshape(B, config["output_size"], P, D)


if __name__ == "__main__":
    # Small, deterministic configuration consistent with the module's __init__.
    config = dict(
        norm_on_last_input=True,
        used_norm="all",          # MotionLayerNorm over (num_points, num_dims)
        input_size=8,             # seq_len of input
        output_size=8,            # future frames produced
        num_points=4,
        num_dims=8,
        dropout_value=0.1,        # dropout exists, but eval mode => identity
    )
    # B=8 with F=32 -> TB=4 batches per grid step (128 lanes), 2 parallel grid steps.
    B, S, P, D = 8, config["input_size"], config["num_points"], config["num_dims"]
    F = P * D

    key = jax.random.PRNGKey(0)
    k_x, k_w = jax.random.split(key)
    x = jax.random.normal(k_x, (B, S, P, D), dtype=jnp.float32)

    # Deterministic parameter init (torch LayerNorm defaults: gamma=1, beta=0).
    params = dict(
        gamma=jnp.ones((P, D), jnp.float32),
        beta=jnp.zeros((P, D), jnp.float32),
        w_time=0.1 * jax.random.normal(k_w, (config["output_size"], S), dtype=jnp.float32),
    )

    out = base_module_forward(params, x, future_size=config["output_size"],
                              config=config, training=False)
    out = jax.block_until_ready(out)

    ref = _reference_forward(params, x, config)
    assert out.shape == (B, config["output_size"], P, D)
    assert jnp.allclose(out, ref, atol=1e-3, rtol=1e-3), "mismatch vs pure-JAX reference"

    # Also exercise the allow_unbatched path (B=1 is padded to a full lane tile).
    out_unbatched = base_module_forward(params, x[0], future_size=config["output_size"],
                                        config=config, training=False)
    out_unbatched = jax.block_until_ready(out_unbatched)
    assert out_unbatched.shape == (config["output_size"], P, D)
    assert jnp.allclose(out_unbatched, ref[0], atol=1e-3, rtol=1e-3)

    print("KERNEL_OK")
</pallas_src>

<mosaic_0001>
module attributes {stable_mosaic.version = 11 : i64} {
  func.func @kernel(%arg0: i32, %arg1: memref<1xi32, #tpu.memory_space<smem>>, %arg2: memref<8x128xf32, #tpu.memory_space<vmem>>, %arg3: memref<1x128xf32, #tpu.memory_space<vmem>>, %arg4: memref<1x128xf32, #tpu.memory_space<vmem>>, %arg5: memref<128x128xf32, #tpu.memory_space<vmem>>, %arg6: memref<8x8xf32, #tpu.memory_space<vmem>>, %arg7: memref<8x128xf32, #tpu.memory_space<vmem>>) attributes {dimension_semantics = [#tpu.dimension_semantics<parallel>], iteration_bounds = array<i64: 2>, scalar_prefetch = 1 : i64, scratch_operands = 0 : i64, tpu.core_type = #tpu.core_type<tc>, window_params = [{transform_indices = @transform_0, window_bounds = array<i64: 8, 128>}, {pipeline_mode = #tpu.pipeline_mode<synchronous>, transform_indices = @transform_1, window_bounds = array<i64: 1, 128>}, {pipeline_mode = #tpu.pipeline_mode<synchronous>, transform_indices = @transform_2, window_bounds = array<i64: 1, 128>}, {pipeline_mode = #tpu.pipeline_mode<synchronous>, transform_indices = @transform_3, window_bounds = array<i64: 128, 128>}, {pipeline_mode = #tpu.pipeline_mode<synchronous>, transform_indices = @transform_4, window_bounds = array<i64: 8, 8>}, {transform_indices = @transform_5, window_bounds = array<i64: 8, 128>}]} {
    %c0 = arith.constant 0 : index
    %c0_0 = arith.constant 0 : index
    %0 = vector.load %arg2[%c0, %c0_0] : memref<8x128xf32, #tpu.memory_space<vmem>>, vector<8x128xf32>
    %1 = vector.extract_strided_slice %0 {offsets = [7, 0], sizes = [1, 128], strides = [1, 1]} : vector<8x128xf32> to vector<1x128xf32>
    %2 = vector.broadcast %1 : vector<1x128xf32> to vector<8x128xf32>
    %3 = arith.subf %0, %2 : vector<8x128xf32>
    %c0_1 = arith.constant 0 : index
    %c0_2 = arith.constant 0 : index
    %4 = vector.load %arg5[%c0_1, %c0_2] : memref<128x128xf32, #tpu.memory_space<vmem>>, vector<128x128xf32>
    %cst = arith.constant dense<0.000000e+00> : vector<8x128xf32>
    %5 = tpu.matmul %3, %4, %cst {dimension_numbers = #tpu.dot_dimension_numbers<[1], [0], [0], [1], [0, 0, 1, 1], [], []>} : vector<8x128xf32>, vector<128x128xf32>, vector<8x128xf32> -> vector<8x128xf32>
    %6 = arith.subf %3, %5 : vector<8x128xf32>
    %7 = arith.mulf %6, %6 : vector<8x128xf32>
    %c0_3 = arith.constant 0 : index
    %c0_4 = arith.constant 0 : index
    %8 = vector.load %arg5[%c0_3, %c0_4] : memref<128x128xf32, #tpu.memory_space<vmem>>, vector<128x128xf32>
    %cst_5 = arith.constant dense<0.000000e+00> : vector<8x128xf32>
    %9 = tpu.matmul %7, %8, %cst_5 {dimension_numbers = #tpu.dot_dimension_numbers<[1], [0], [0], [1], [0, 0, 1, 1], [], []>} : vector<8x128xf32>, vector<128x128xf32>, vector<8x128xf32> -> vector<8x128xf32>
    %cst_6 = arith.constant 9.99999974E-6 : f32
    %10 = vector.broadcast %cst_6 : f32 to vector<8x128xf32>
    %11 = arith.addf %9, %10 : vector<8x128xf32>
    %12 = math.rsqrt %11 : vector<8x128xf32>
    %13 = arith.mulf %6, %12 : vector<8x128xf32>
    %c0_7 = arith.constant 0 : index
    %c0_8 = arith.constant 0 : index
    %14 = vector.load %arg3[%c0_7, %c0_8] : memref<1x128xf32, #tpu.memory_space<vmem>>, vector<1x128xf32>
    %15 = vector.broadcast %14 : vector<1x128xf32> to vector<8x128xf32>
    %16 = arith.mulf %13, %15 : vector<8x128xf32>
    %c0_9 = arith.constant 0 : index
    %c0_10 = arith.constant 0 : index
    %17 = vector.load %arg4[%c0_9, %c0_10] : memref<1x128xf32, #tpu.memory_space<vmem>>, vector<1x128xf32>
    %18 = vector.broadcast %17 : vector<1x128xf32> to vector<8x128xf32>
    %19 = arith.addf %16, %18 : vector<8x128xf32>
    %c0_11 = arith.constant 0 : index
    %c0_12 = arith.constant 0 : index
    %20 = vector.load %arg6[%c0_11, %c0_12] : memref<8x8xf32, #tpu.memory_space<vmem>>, vector<8x8xf32>
    %cst_13 = arith.constant dense<0.000000e+00> : vector<8x128xf32>
    %21 = tpu.matmul %20, %19, %cst_13 {dimension_numbers = #tpu.dot_dimension_numbers<[1], [0], [0], [1], [0, 0, 1, 1], [], []>} : vector<8x8xf32>, vector<8x128xf32>, vector<8x128xf32> -> vector<8x128xf32>
    %22 = vector.broadcast %1 : vector<1x128xf32> to vector<8x128xf32>
    %23 = arith.addf %21, %22 : vector<8x128xf32>
    %c0_14 = arith.constant 0 : index
    %c0_15 = arith.constant 0 : index
    %24 = vector.load %arg7[%c0_14, %c0_15] : memref<8x128xf32, #tpu.memory_space<vmem>>, vector<8x128xf32>
    tpu.vector_store %arg7[%c0_14, %c0_15], %23 {strides = array<i32>} : memref<8x128xf32, #tpu.memory_space<vmem>>, vector<8x128xf32>,
    return
  }
  func.func @transform_0(%arg0: i32, %arg1: memref<1xi32, #tpu.memory_space<smem>>) -> (i32, i32) {
    %c0_i32 = arith.constant 0 : i32
    %c0_i32_0 = arith.constant 0 : i32
    return %c0_i32, %arg0 : i32, i32
  }
  func.func @transform_1(%arg0: i32, %arg1: memref<1xi32, #tpu.memory_space<smem>>) -> (i32, i32) {
    %c0_i32 = arith.constant 0 : i32
    %c0_i32_0 = arith.constant 0 : i32
    %c0_i32_1 = arith.constant 0 : i32
    return %c0_i32, %c0_i32_0 : i32, i32
  }
  func.func @transform_2(%arg0: i32, %arg1: memref<1xi32, #tpu.memory_space<smem>>) -> (i32, i32) {
    %c0_i32 = arith.constant 0 : i32
    %c0_i32_0 = arith.constant 0 : i32
    %c0_i32_1 = arith.constant 0 : i32
    return %c0_i32, %c0_i32_0 : i32, i32
  }
  func.func @transform_3(%arg0: i32, %arg1: memref<1xi32, #tpu.memory_space<smem>>) -> (i32, i32) {
    %c0_i32 = arith.constant 0 : i32
    %c0_i32_0 = arith.constant 0 : i32
    %c0_i32_1 = arith.constant 0 : i32
    return %c0_i32, %c0_i32_0 : i32, i32
  }
  func.func @transform_4(%arg0: i32, %arg1: memref<1xi32, #tpu.memory_space<smem>>) -> (i32, i32) {
    %c0_i32 = arith.constant 0 : i32
    %c0_i32_0 = arith.constant 0 : i32
    %c0_i32_1 = arith.constant 0 : i32
    return %c0_i32, %c0_i32_0 : i32, i32
  }
  func.func @transform_5(%arg0: i32, %arg1: memref<1xi32, #tpu.memory_space<smem>>) -> (i32, i32) {
    %c0_i32 = arith.constant 0 : i32
    %c0_i32_0 = arith.constant 0 : i32
    return %c0_i32, %arg0 : i32, i32
  }
}

</mosaic_0001>

<bundles_post_ra>
// kernel: tpu_custom_call.1
= control target key start
LH: loop header
LB: loop body
LE: loop exit
PB: predicated region body
PF: predicated region fallthrough
CT: control target
= control target key end

     0   :  { %12 = vsyncpa [#allocation5], 0  ;;  %s1241_s0 = inlined_call_operand.<no memory space> [shape: s32[1], index: 0, kind: input, shape index: {}]   ;;  %s1242_s1 = inlined_call_operand.hbm [shape: f32[8,256], index: 1, kind: input, shape index: {}]   ;;  %s1243_s2 = inlined_call_operand.vmem [shape: f32[1,128], index: 2, kind: input, shape index: {}]   ;;  %s1244_s3 = inlined_call_operand.vmem [shape: f32[1,128], index: 3, kind: input, shape index: {}]   ;;  %s1245_s4 = inlined_call_operand.hbm [shape: f32[128,128], index: 4, kind: input, shape index: {}]   ;;  %s1246_s5 = inlined_call_operand.vmem [shape: f32[8,8], index: 5, kind: input, shape index: {}]   ;;  %s1247_s6 = inlined_call_operand.hbm [shape: f32[8,256], index: 6, kind: output, shape index: {}]  }
   0x1   :  { %14 = vsyncpa [#allocation5 + $0x1], 0 }
   0x2   :  { %15 = vsyncpa [#allocation8], 0 }
   0x3   :  { %16 = vsyncpa [#allocation6], 0 }
   0x4   :  { %18 = vsyncpa [#allocation6 + $0x1], 0  ;;  %s1022_s0 = smov 0   ;;  %s1024_s21 = smov 0  }
   0x5   :  { %s1026_s22 = smov 0   ;;  %s1028_s23 = smov 0  }
   0x6 LB: > { %s1043_s24 = sadd.s32 4294967295, %s977_s23   ;;  %s609_s25 = sadd.s32 4294967294, %s977_s23   ;;  %s977_s23 = sphi %s1028_s23, %s1267_s23   ;;  %s973_s22 = sphi %s1026_s22, %s1266_s22   ;;  %s969_s21 = sphi %s1024_s21, %s1265_s21   ;;  %s965_s0 = sphi %s1022_s0, %s1264_s0  }
   0x7   : > { %p44_p0 = scmp.ne.s32.totalorder %s969_s21, %s965_s0  ;;  %p1248_p1 = scmp.eq.s32.totalorder %s1043_s24, 0 }
   0x8   : > { %p158_p3 = scmp.eq.s32.totalorder %s609_s25, 1  ;;  %p610_p5 = scmp.ge.s32.totalorder %s977_s23, 1 }
   0x9   : > { %p1052_p4 = por %p1248_p1, %p44_p0  ;;  %p165_p7 = scmp.lt.s32.totalorder %s977_s23, 3 }
   0xa   : > { %p1057_p6 = por %p158_p3, %p44_p0  ;;  %s979_s29 = smov [#allocation7]  }
   0xb   : > { %s1251_s26 = scalar_select %p1052_p4, 1, 0 }
   0xc   : > { %s1252_s27 = scalar_select %p1057_p6, 1, 0 }
   0xd   : > { %p1062_p8 = pnand %p610_p5, %p165_p7  ;;  %s183_s30 = sshll.u32 %s979_s29, 4  ;;  %s1066_s30 = int_to_ptr.vmem [resolvable:$true] %s183_s30 }
   0xe   : > { %s1078_s8 = sadd.s32 1, %s977_s23   ;;  %s31_s9 = sadd.s32 1, %s973_s22 }
   0xf   : > { %s1253_s28 = scalar_select %p1062_p8, 1, 0 }
  0x10   : > { %p793_p9 = pneg %p1062_p8  ;;  %s28_s10 = ssub.s32 %s977_s23, %s1078_s8 }
  0x11   : > { %s849_s13 = scalar_lea.hbm %s1245_s4, 2048 }
  0x12   : > { %p1073_p11 = pnand %p793_p9, %p1248_p1  ;;  %p850_p12 = scmp.ne.s32.totalorder %s1245_s4, %s849_s13 }
  0x13   : > { %p856_p5 = scmp.lt.u32.totalorder %s849_s13, %s1245_s4 }
  0x14   : > { %p851_p13 = pneg %p1073_p11 }
  0x16   : > { %p852_p0 = pnand %p851_p13, %p850_p12 }
  0x18   : > { %p853_p3 = pneg %p852_p0 }
  0x1a   : > { %p858_p7 = pnand %p856_p5, %p853_p3 }
  0x1c   : > { %861 = shalt.err (!%p858_p7)
}
  0x1d   : > { %s862_s18 = scalar_lea.vmem %s1066_s30, 2048  ;;  %p870_p2 = scmp.lt.s32.totalorder %s1066_s30, %s1066_s30 }
  0x1e   : > { %p863_p9 = scmp.ne.s32.totalorder %s1066_s30, %s862_s18  ;;  %p871_p6 = scmp.lt.s32.totalorder %s862_s18, %s862_s18 }
  0x20   : > { %p865_p10 = pnand %p863_p9, %p851_p13  ;;  %p872_p4 = por %p871_p6, %p870_p2 }
  0x22   : > { %p866_p1 = pneg %p865_p10 }
  0x24   : > { %p873_p8 = pnand %p872_p4, %p866_p1 }
  0x26   : > { %876 = shalt.err (!%p873_p8)
}
  0x27   : > { %s980_s19 = smov 128   ;;  %s981_s20 = smov 8  }
  0x28   : > { %796 = dma.hbm_to_vmem [thread:$0]  (!%p1073_p11), %s1245_s4, 2048, %s1066_s30, [#allocation8], %s980_s19, %s980_s19, %s981_s20  }
  0x29   : > { %p29_p2 = scmp.eq.s32.totalorder %s28_s10, 0  ;;  %p38_p1 = scmp.ne.s32.totalorder %s973_s22, %s969_s21 }
  0x2a   : > { %p39_p4 = scmp.eq.s32.totalorder %s977_s23, 0  ;;  %p806_p6 = scmp.lt.s32.totalorder %s977_s23, 2 }
  0x2b   : > { %s1109_s11 = scalar_select %p29_p2, %s973_s22, %s31_s9  }
  0x2c   : > { %p40_p8 = por %p39_p4, %p38_p1  ;;  %p1255_p10 = scmp.eq.s32.totalorder %s1043_s24, 1 }
  0x2d   : > { %s200_s13 = sand.u32 1, %s973_s22   ;;  %s614_s14 = sshll.u32 %s977_s23, 7 }
  0x2e   : > { %p1113_p12 = por %p1255_p10, %p38_p1  ;;  %s613_s15 = sshll.u32 %s200_s13, 3 }
  0x2f   : > { %s1122_s17 = scalar_lea.hbm %s1242_s1, %s614_s14  ;;  %s204_s30 = scalar_lea.vmem [#allocation4], %s613_s15 }
  0x30   : > { %s211_s9 = sshll.u32 %s204_s30, 4  ;;  %p1124_p11 = pnand %p806_p6, %p40_p8  ;;  %s1128_s9 = int_to_ptr.vmem [resolvable:$true] %s211_s9 }
  0x31   : > { %s201_s18 = scalar_lea.sflag [#allocation5], %s200_s13  ;;  %s877_s19 = scalar_lea.hbm %s1122_s17, 128 }
  0x32   : > { %p878_p13 = scmp.ne.s32.totalorder %s1122_s17, %s877_s19  ;;  %p879_p0 = pneg %p1124_p11 }
  0x33   : > { %s882_s29 = scalar_lea.hbm %s1242_s1, 256  ;;  %p883_p7 = scmp.lt.u32.totalorder %s1122_s17, %s1242_s1 }
  0x34   : > { %p880_p3 = pnand %p879_p0, %p878_p13  ;;  %p884_p9 = scmp.lt.u32.totalorder %s882_s29, %s877_s19 }
  0x35   : > { %p886_p1 = scmp.lt.u32.totalorder %s877_s19, %s1122_s17 }
  0x36   : > { %p881_p5 = pneg %p880_p3  ;;  %p885_p2 = por %p884_p9, %p883_p7 }
  0x38   : > { %p887_p4 = por %p886_p1, %p885_p2 }
  0x3a   : > { %p888_p6 = pnand %p887_p4, %p881_p5 }
  0x3c   : > { %891 = shalt.err (!%p888_p6)
}
  0x3d   : > { %s892_s13 = scalar_lea.vmem %s1128_s9, 128  ;;  %s982_s7 = smov [#allocation4]  }
  0x3e   : > { %p893_p8 = scmp.ne.s32.totalorder %s1128_s9, %s892_s13  ;;  %s897_s16 = sshll.u32 %s982_s7, 4  ;;  %s898_s16 = int_to_ptr.vmem [resolvable:$false] %s897_s16 }
  0x3f   : > { %s899_s30 = scalar_lea.vmem %s898_s16, 256  ;;  %p900_p3 = scmp.lt.s32.totalorder %s1128_s9, %s898_s16 }
  0x40   : > { %p895_p10 = pnand %p893_p8, %p879_p0  ;;  %p901_p7 = scmp.lt.s32.totalorder %s899_s30, %s892_s13 }
  0x42   : > { %p896_p13 = pneg %p895_p10  ;;  %p902_p9 = por %p901_p7, %p900_p3 }
  0x44   : > { %p903_p2 = pnand %p902_p9, %p896_p13 }
  0x46   : > { %906 = shalt.err (!%p903_p2)
}
  0x47   : > { %800 = dma.hbm_to_vmem [thread:$0]  (!%p1124_p11), %s1122_s17, 128, %s1128_s9, %s201_s18  }
  0x48   : > { %p1258_p5 = scmp.ne.s32.totalorder %s1253_s28, 0 }
  0x49   : > { %s1158_s19 = sand.u32 (!%p1258_p5), 1, %s969_s21   ;;  %p1259_p0 = scmp.ne.s32.totalorder (!%p1258_p5), %s1251_s26, 0 }
  0x4a   : > { %220 = sbr.rel (%p1258_p5) target bundleno = 795 (0x31b), region = 40  ;;  %s616_s20 = sshll.u32 (!%p1258_p5), %s1158_s19, 3 }
  0x4b   : > { %s223_s25 = scalar_lea.sflag (!%p1258_p5), [#allocation5], %s1158_s19  ;;  %s1164_s29 = scalar_lea.vmem (!%p1258_p5), [#allocation4], %s616_s20 }
  0x51   : > { %952 = dma.done.wait (%p1259_p0), %s223_s25, 128  }
  0x52   : > { %954 = vsyncadd (%p1259_p0), %s223_s25, 4294967168  ;;  %p1260_p11 = scmp.eq.s32.totalorder %s1043_s24, 0 }
  0x54   : > { %956 = dma.done.wait (%p1260_p11), [#allocation8], 2048   ;;  %p1261_p1 = pmov %p1260_p11 }
  0x55   : > { %v983_v0 = vmov 0.0|0.0   ;;  %vm984_vm0 = vmmov 0   ;;  %v985_v1 = vmov 0.0   ;;  %v263_v2 = vld [vmem:[#allocation7] sm:$0xff]  ;;  %v264_v3 = vld [vmem:[#allocation7 + $0x8] sm:$0xff]  ;;  %v265_v4 = vld [vmem:[#allocation7 + $0x10] sm:$0xff]  ;;  %v258_v16 = vlaneseq }
  0x56   : > { %958 = vsyncadd (%p1261_p1), [#allocation8], 4294965248  ;;  %737 = vmatprep.subr.bf16.mxu0 %v983_v0  ;;  %694 = vmatprep.mubr.msk.f32.mxu0 %vm984_vm0, %v985_v1  ;;  %v738_v5 = vpack.c.bf16 %v264_v3, %v263_v2  ;;  %v266_v6 = vld [vmem:[#allocation7 + $0x18] sm:$0xff]  ;;  %v267_v8 = vld [vmem:[#allocation7 + $0x20] sm:$0xff]  ;;  %vm440_vm1 = vcmask 64512   ;;  %s623_s14 = sshll.u32 %s1043_s24, 7 }
  0x57   : > { %761 = vmatprep.subr.bf16.mxu1 %v983_v0  ;;  %729 = vmatprep.mubr.msk.f32.mxu1 %vm984_vm0, %v985_v1  ;;  %v741_v7 = vpack.c.bf16 %v266_v6, %v265_v4  ;;  %v268_v9 = vld [vmem:[#allocation7 + $0x28] sm:$0xff]  ;;  %v269_v11 = vld [vmem:[#allocation7 + $0x30] sm:$0xff]  ;;  %v270_v12 = vld [vmem:[#allocation7 + $0x38] sm:$0xff]  ;;  %v259_v20 = vshrl.u32 %v258_v16, 7  ;;  %s256_s15 = scalar_lea.vmem [#allocation9], %s616_s20  ;;  %s1197_s30 = scalar_lea.hbm %s1247_s6, %s623_s14 }
  0x58   : > { %739 = vmatpush3.bf16.msra.mxu0 %v738_v5  ;;  %763 = vmatpush3.bf16.msra.mxu1 %v738_v5  ;;  %v744_v10 = vpack.c.bf16 %v268_v9, %v267_v8  ;;  %v747_v13 = vpack.c.bf16 %v270_v12, %v269_v11  ;;  %v271_v14 = vld [vmem:[#allocation7 + $0x40] sm:$0xff]  ;;  %v272_v15 = vld [vmem:[#allocation7 + $0x48] sm:$0xff]  ;;  %v273_v18 = vld [vmem:[#allocation7 + $0x50] sm:$0xff]  ;;  %s529_s13 = sshll.u32 %s256_s15, 4  ;;  %s516_s25 = scalar_lea.sflag [#allocation6], %s1158_s19  ;;  %s1199_s13 = int_to_ptr.vmem [resolvable:$true] %s529_s13 }
  0x59   : > { %740 = vmatprep.subr.bf16.mxu0 %v983_v0  ;;  %764 = vmatprep.subr.bf16.mxu1 %v983_v0  ;;  %v750_v17 = vpack.c.bf16 %v272_v15, %v271_v14  ;;  %v274_v19 = vld [vmem:[#allocation7 + $0x58] sm:$0xff]  ;;  %v275_v22 = vld [vmem:[#allocation7 + $0x60] sm:$0xff]  ;;  %v276_v23 = vld [vmem:[#allocation7 + $0x68] sm:$0xff]  ;;  %v260_v24 = vsub.s32 7, %v259_v20  ;;  %s986_s24 = smov [#allocation9]  }
  0x5a   : > { %v753_v21 = vpack.c.bf16 %v274_v19, %v273_v18  ;;  %v756_v25 = vpack.c.bf16 %v276_v23, %v275_v22  ;;  %v257_v26 = vld [vmem:[%s1164_s29] sm:$0xff]  ;;  %s907_s29 = scalar_lea.vmem %s1199_s13, 128  ;;  %s911_s20 = sshll.u32 %s986_s24, 4  ;;  %s912_s20 = int_to_ptr.vmem [resolvable:$false] %s911_s20 }
  0x5b   : > { %v277_v27 = vld [vmem:[#allocation7 + $0x70] sm:$0xff]  ;;  %v278_v28 = vld [vmem:[#allocation7 + $0x78] sm:$0xff]  ;;  %v261_v29 = vrot.slane %v257_v26, %v260_v24  ;;  %p908_p4 = scmp.ne.s32.totalorder %s1199_s13, %s907_s29  ;;  %s913_s26 = scalar_lea.vmem %s912_s20, 256 }
  0x5c   : > { %742 = vmatpush3.bf16.msra.mxu0 %v741_v7  ;;  %766 = vmatpush3.bf16.msra.mxu1 %v741_v7  ;;  %v759_v30 = vpack.c.bf16 %v278_v28, %v277_v27  ;;  %v619_v40 = vld [vmem:[%s1243_s2] ss:$0 sm:$0xff]  ;;  %p914_p10 = scmp.lt.s32.totalorder %s1199_s13, %s912_s20  ;;  %p915_p13 = scmp.lt.s32.totalorder %s913_s26, %s907_s29 }
  0x5d   : > { %743 = vmatprep.subr.bf16.mxu0 %v983_v0  ;;  %767 = vmatprep.subr.bf16.mxu1 %v983_v0  ;;  %v262_v31 = vsub.f32 %v257_v26, %v261_v29  ;;  %v620_v42 = vld [vmem:[%s1244_s3] ss:$0 sm:$0xff]  ;;  %p909_p6 = pnand %p908_p4, %p1113_p12 }
  0x5e   : > { %v439_v45 = vld [vmem:[%s1246_s5] sm:$0xff]  ;;  %p916_p3 = por %p915_p13, %p914_p10 }
  0x5f   : > { %p910_p8 = pneg %p909_p6 }
  0x60   : > { %745 = vmatpush3.bf16.msra.mxu0 %v744_v10  ;;  %769 = vmatpush3.bf16.msra.mxu1 %v744_v10 }
  0x61   : > { %746 = vmatprep.subr.bf16.mxu0 %v983_v0  ;;  %770 = vmatprep.subr.bf16.mxu1 %v983_v0  ;;  %p917_p7 = pnand %p916_p3, %p910_p8 }
  0x64   : > { %748 = vmatpush3.bf16.msra.mxu0 %v747_v13  ;;  %772 = vmatpush3.bf16.msra.mxu1 %v747_v13 }
  0x65   : > { %749 = vmatprep.subr.bf16.mxu0 %v983_v0  ;;  %773 = vmatprep.subr.bf16.mxu1 %v983_v0 }
  0x68   : > { %751 = vmatpush3.bf16.msra.mxu0 %v750_v17  ;;  %775 = vmatpush3.bf16.msra.mxu1 %v750_v17 }
  0x69   : > { %752 = vmatprep.subr.bf16.mxu0 %v983_v0  ;;  %776 = vmatprep.subr.bf16.mxu1 %v983_v0 }
  0x6c   : > { %754 = vmatpush3.bf16.msra.mxu0 %v753_v21  ;;  %778 = vmatpush3.bf16.msra.mxu1 %v753_v21 }
  0x6d   : > { %755 = vmatprep.subr.bf16.mxu0 %v983_v0  ;;  %779 = vmatprep.subr.bf16.mxu1 %v983_v0 }
  0x70   : > { %757 = vmatpush3.bf16.msra.mxu0 %v756_v25  ;;  %781 = vmatpush3.bf16.msra.mxu1 %v756_v25 }
  0x71   : > { %758 = vmatprep.subr.bf16.mxu0 %v983_v0  ;;  %782 = vmatprep.subr.bf16.mxu1 %v983_v0 }
  0x74   : > { %760 = vmatpush3.bf16.msra.mxu0 %v759_v30  ;;  %784 = vmatpush3.bf16.msra.mxu1 %v759_v30 }
  0x75   : > { %732 = vmatprep.subr.mxu0 %v985_v1 }
  0x77   : > { %695 = vmatmul.mubr.f32.vlgmr.msra.gmra.mrb[0].mxu0 %v262_v31 }
  0x78   : > { %734 = vmatprep.mubr.msk.f32.mxu0 %vm984_vm0, %v985_v1 }
 0x14a   : > { %v345_v32 = vpop.f32.mrb[0].mxu0 }
 0x14b   : > { %v349_v33 = vsub.f32 %v262_v31, %v345_v32  ;;  %v696_v34 = vpop.f32.mrb[1].mxu0 }
 0x14d   : > { %v350_v35 = vmul.f32 %v349_v33, %v349_v33 }
 0x14f   : > { %730 = vmatmul.mubr.f32.vlgmr.msra.gmra.mrb[0].mxu1 %v350_v35 }
 0x222   : > { %v417_v36 = vpop.f32.mrb[0].mxu1 }
 0x223   : > { %v418_v37 = vadd.f32 1e-05, %v417_v36  ;;  %v731_v38 = vpop.f32.mrb[1].mxu1 }
 0x225   : > { %847 = vrsqrt.f32 %v418_v37 }
 0x22f   : > { %v848_v39 = vpop.eup %847 }
 0x230   : > { %v422_v41 = vmul.f32 %v848_v39, %v349_v33 }
 0x232   : > { %v430_v43 = vmul.f32 %v619_v40, %v422_v41 }
 0x234   : > { %v438_v44 = vadd.f32 %v620_v42, %v430_v43 }
 0x236   : > { %733 = vmatpush3.msra.mxu0 %v438_v44 }
 0x237   : > { %735 = vmatmul.mubr.msk.f32.vlgmr.msra.gmra.mrb[2].mxu0 %vm440_vm1, %v439_v45 }
 0x30a   : > { %v510_v46 = vpop.f32.mrb[2].mxu0 }
 0x30b   : > { %v511_v47 = vadd.f32 %v510_v46, %v261_v29  ;;  %v736_v48 = vpop.f32.mrb[3].mxu0 }
 0x30d   : > { %514 = vst [vmem:[%s256_s15] sm:$0xff] %v511_v47 }
 0x30e   : > { %920 = shalt.err (!%p917_p7)
}
 0x30f   : > { %s921_s19 = scalar_lea.hbm %s1197_s30, 128  ;;  %s925_s9 = scalar_lea.hbm %s1247_s6, 256 }
 0x310   : > { %p922_p9 = scmp.ne.s32.totalorder %s1197_s30, %s921_s19  ;;  %p926_p0 = scmp.lt.u32.totalorder %s1197_s30, %s1247_s6 }
 0x311   : > { %p927_p11 = scmp.lt.u32.totalorder %s925_s9, %s921_s19  ;;  %p929_p4 = scmp.lt.u32.totalorder %s921_s19, %s1197_s30 }
 0x312   : > { %p923_p2 = pnand %p922_p9, %p1113_p12 }
 0x313   : > { %p928_p1 = por %p927_p11, %p926_p0 }
 0x314   : > { %p924_p5 = pneg %p923_p2 }
 0x315   : > { %p930_p6 = por %p929_p4, %p928_p1 }
 0x317   : > { %p931_p8 = pnand %p930_p6, %p924_p5 }
 0x319   : > { %934 = shalt.err (!%p931_p8)
}
 0x31a   : > { %791 = dma.vmem_to_hbm [thread:$0]  (%p1113_p12), %s1199_s13, 128, %s1197_s30, %s516_s25  }
 0x31b PF: > { %s541_s14 = sand.u32 1, %s965_s0   ;;  %p1262_p10 = scmp.ne.s32.totalorder %s1252_s27, 0 }
 0x31c   : > { %p1263_p13 = scmp.ge.s32.totalorder %s977_s23, 2  ;;  %s542_s15 = scalar_lea.sflag [#allocation6], %s541_s14 }
 0x31e   : > { %p802_p3 = pnand %p1263_p13, %p1262_p10 }
 0x320   : > { %960 = dma.done.wait (!%p802_p3), %s542_s15, 128  }
 0x321   : > { %962 = vsyncadd (!%p802_p3), %s542_s15, 4294967168  ;;  %p21_p7 = scmp.ge.s32.totalorder %s1078_s8, 4   ;;  %s1264_s0 = smov %s969_s21 }
 0x322   : > { %s1265_s21 = smov %s973_s22  ;;  %s1266_s22 = smov %s1109_s11 }
 0x323   : > { %s1267_s23 = smov %s1078_s8  ;;  %23 = sbr.rel (!%p21_p7) target bundleno = 6 (0x6), region = 89 }
 0x32a   :  { %547 = vsyncpa [#allocation5], 1 }
 0x32b   :  { %549 = vsyncpa [#allocation5 + $0x1], 1 }
 0x32c   :  { %550 = vsyncpa [#allocation8], 1 }
 0x32d   :  { %551 = vsyncpa [#allocation6], 1 }
 0x32e   :  { %553 = vsyncpa [#allocation6 + $0x1], 1 }

</bundles_post_ra>
